<compile_context>
chip_gen: v5e
topology: v5e:2x2
jax: 0.10.0
libtpu: 0.0.40
codegen_flags: <defaults>
</compile_context>

<pallas_src>
import jax
import jax.numpy as jnp
from jax.experimental import pallas as pl
from jax.experimental.pallas import tpu as pltpu


def _doubleexp_kernel(scale_ref, x_ref, o_ref):
    # scale_ref: (1,) f32 in SMEM.  Compute in f32, round once at the store.
    x = x_ref[...].astype(jnp.float32)
    sx = scale_ref[0] * x
    o_ref[...] = (jnp.exp(sx) + jnp.exp(-sx) - 2.0).astype(o_ref.dtype)


def _round_up(a, b):
    return ((a + b - 1) // b) * b


def doubleexp_loss(x, scale=5.0, *, target_block_bytes=4 * 1024 * 1024):
    """Elementwise double-exponential loss.  Accepts any shape (e.g. NCHW)."""
    orig_shape = x.shape
    orig_dtype = x.dtype
    n = x.size
    if n == 0:
        return x

    # Runtime scale lives in SMEM (one sld per block) -> no recompile per value.
    scale_arr = jnp.asarray(scale, dtype=jnp.float32).reshape(1)
    smem_spec = pl.BlockSpec(memory_space=pltpu.MemorySpace.SMEM)

    itemsize = jnp.dtype(orig_dtype).itemsize
    cost = pl.CostEstimate(
        flops=4 * n,                      # mul, neg, add, sub per element
        transcendentals=2 * n,            # two exps per element
        bytes_accessed=2 * n * itemsize,  # read + write
    )
    cparams = pltpu.CompilerParams(
        dimension_semantics=("parallel",),
        # 2 in + 2 out double buffers at <=4 MiB blocks = <=16 MiB of VMEM;
        # 32 MiB scoped limit is safe on v5e/v6e (128 MiB phys) and v7x (64 MiB).
        vmem_limit_bytes=32 * 1024 * 1024,
    )

    flat = x.reshape(-1)  # free bitcast for a dense row-major array
    lane = 128

    if n % lane == 0:
        # ---- zero-copy 2-D slab path (no pad, no slice) ----
        # Width 1024 when it divides n, else 128; in both cases every block is
        # one contiguous HBM region of full (8,128) vregs, and block *bytes*
        # (the actual perf lever) are held at ~4 MiB.
        width = 1024 if n % 1024 == 0 else lane
        rows = n // width
        block_elems = max(
            8 * width,
            ((target_block_bytes // itemsize) // (8 * width)) * (8 * width),
        )
        br = block_elems // width  # multiple of 8
        if rows <= br:
            # Small/medium input: split into >=2 blocks when possible so the
            # 'parallel' grid axis shards across v7x's two TensorCores.
            br = _round_up(pl.cdiv(rows, 2), 8) if rows > 8 else rows
        br = min(br, rows)
        slab = flat.reshape(rows, width)
        grid = (pl.cdiv(rows, br),)  # ragged last block masked by Pallas

        out = pl.pallas_call(
            _doubleexp_kernel,
            out_shape=jax.ShapeDtypeStruct((rows, width), orig_dtype),
            grid_spec=pltpu.PrefetchScalarGridSpec(
                num_scalar_prefetch=0,
                grid=grid,
                in_specs=[smem_spec,
                          pl.BlockSpec((br, width), lambda i: (i, 0))],
                out_specs=pl.BlockSpec((br, width), lambda i: (i, 0)),
            ),
            compiler_params=cparams,
            cost_estimate=cost,
        )(scale_arr, slab)
        return out.reshape(orig_shape)

    # ---- ragged path (n not a multiple of 128): stay 1-D, zero extra copies ----
    # Pallas masks the ragged last block; no full-array pad/slice round trips.
    block_elems = 128 * 1024  # multiple of 8*128; modest so VMEM stays small
    be = n if n <= block_elems else block_elems
    grid = (pl.cdiv(n, be),)

    out = pl.pallas_call(
        _doubleexp_kernel,
        out_shape=jax.ShapeDtypeStruct((n,), orig_dtype),
        grid_spec=pltpu.PrefetchScalarGridSpec(
            num_scalar_prefetch=0,
            grid=grid,
            in_specs=[smem_spec,
                      pl.BlockSpec((be,), lambda i: (i,))],
            out_specs=pl.BlockSpec((be,), lambda i: (i,)),
        ),
        compiler_params=cparams,
        cost_estimate=cost,
    )(scale_arr, flat)
    return out.reshape(orig_shape)


if __name__ == "__main__":
    key = jax.random.PRNGKey(0)

    # 1) Main NCHW-shaped check (2048 elems -> zero-copy width-1024 slab path).
    x = jax.random.normal(key, (2, 4, 16, 16), dtype=jnp.float32)
    y = jax.block_until_ready(doubleexp_loss(x, scale=5.0))
    ref = jnp.exp(5.0 * x) + jnp.exp(-5.0 * x) - 2.0
    assert y.shape == x.shape and y.dtype == x.dtype
    assert jnp.allclose(y, ref, rtol=1e-5, atol=1e-5), "mismatch (aligned)"

    # 2) Multiple of 128 but not 1024 (1536 elems) -> width-128 slab, 2 grid
    #    blocks with a ragged (masked) last block.
    x1 = jax.random.normal(jax.random.PRNGKey(2), (4, 3, 8, 16), dtype=jnp.float32)
    y1 = jax.block_until_ready(doubleexp_loss(x1, scale=5.0))
    ref1 = jnp.exp(5.0 * x1) + jnp.exp(-5.0 * x1) - 2.0
    assert y1.shape == x1.shape and y1.dtype == x1.dtype
    assert jnp.allclose(y1, ref1, rtol=1e-5, atol=1e-5), "mismatch (128-aligned)"

    # 3) Non-128-aligned shape (105 elems) -> 1-D in-kernel ragged path (no pad).
    x2 = jax.random.normal(jax.random.PRNGKey(1), (3, 5, 7), dtype=jnp.float32)
    y2 = jax.block_until_ready(doubleexp_loss(x2, scale=5.0))
    ref2 = jnp.exp(5.0 * x2) + jnp.exp(-5.0 * x2) - 2.0
    assert y2.shape == x2.shape and y2.dtype == x2.dtype
    assert jnp.allclose(y2, ref2, rtol=1e-5, atol=1e-5), "mismatch (ragged)"

    print("KERNEL_OK")
</pallas_src>

<mosaic_0001>
module attributes {stable_mosaic.version = 11 : i64} {
  func.func @_doubleexp_kernel(%arg0: i32, %arg1: memref<1xf32, #tpu.memory_space<smem>>, %arg2: memref<2x1024xf32, #tpu.memory_space<vmem>>, %arg3: memref<2x1024xf32, #tpu.memory_space<vmem>>) attributes {dimension_semantics = [#tpu.dimension_semantics<parallel>], iteration_bounds = array<i64: 1>, scalar_prefetch = 0 : i64, scratch_operands = 0 : i64, tpu.core_type = #tpu.core_type<tc>, window_params = [{transform_indices = @transform_0, window_bounds = array<i64: 1>}, {transform_indices = @transform_1, window_bounds = array<i64: 2, 1024>}, {transform_indices = @transform_2, window_bounds = array<i64: 2, 1024>}]} {
    %c0 = arith.constant 0 : index
    %c0_0 = arith.constant 0 : index
    %0 = vector.load %arg2[%c0, %c0_0] : memref<2x1024xf32, #tpu.memory_space<vmem>>, vector<2x1024xf32>
    %c0_1 = arith.constant 0 : index
    %1 = memref.load %arg1[%c0_1] : memref<1xf32, #tpu.memory_space<smem>>
    %2 = vector.broadcast %1 : f32 to vector<2x1024xf32>
    %3 = arith.mulf %2, %0 : vector<2x1024xf32>
    %4 = math.exp %3 : vector<2x1024xf32>
    %cst = arith.constant 0.000000e+00 : f32
    %5 = vector.broadcast %cst : f32 to vector<2x1024xf32>
    %6 = arith.subf %5, %3 : vector<2x1024xf32>
    %7 = math.exp %6 : vector<2x1024xf32>
    %8 = arith.addf %4, %7 : vector<2x1024xf32>
    %cst_2 = arith.constant 2.000000e+00 : f32
    %9 = vector.broadcast %cst_2 : f32 to vector<2x1024xf32>
    %10 = arith.subf %8, %9 : vector<2x1024xf32>
    %c0_3 = arith.constant 0 : index
    %c0_4 = arith.constant 0 : index
    %11 = vector.load %arg3[%c0_3, %c0_4] : memref<2x1024xf32, #tpu.memory_space<vmem>>, vector<2x1024xf32>
    tpu.vector_store %arg3[%c0_3, %c0_4], %10 {strides = array<i32>} : memref<2x1024xf32, #tpu.memory_space<vmem>>, vector<2x1024xf32>,
    return
  }
  func.func @transform_0(%arg0: i32) -> i32 {
    %c0_i32 = arith.constant 0 : i32
    %c0_i32_0 = arith.constant 0 : i32
    return %c0_i32 : i32
  }
  func.func @transform_1(%arg0: i32) -> (i32, i32) {
    %c0_i32 = arith.constant 0 : i32
    %c0_i32_0 = arith.constant 0 : i32
    return %arg0, %c0_i32 : i32, i32
  }
  func.func @transform_2(%arg0: i32) -> (i32, i32) {
    %c0_i32 = arith.constant 0 : i32
    %c0_i32_0 = arith.constant 0 : i32
    return %arg0, %c0_i32 : i32, i32
  }
}

</mosaic_0001>

<bundles_post_ra>
// kernel: tpu_custom_call.1
= control target key start
LH: loop header
LB: loop body
LE: loop exit
PB: predicated region body
PF: predicated region fallthrough
CT: control target
= control target key end

     0   :  { %8 = vsyncpa [#allocation4], 0  ;;  %s156_s0 = inlined_call_operand.<no memory space> [shape: f32[1], index: 0, kind: input, shape index: {}]   ;;  %s157_s1 = inlined_call_operand.hbm [shape: f32[2,1024], index: 1, kind: input, shape index: {}]   ;;  %s158_s2 = inlined_call_operand.hbm [shape: f32[2,1024], index: 2, kind: output, shape index: {}]  }
   0x1   :  { %9 = vsyncpa [#allocation5], 0  ;;  %s17_s11 = sshll.u32 %s157_s1, 4  ;;  %s130_s12 = smov [#allocation3]   ;;  %s18_s11 = int_to_ptr.hbm [resolvable:$true] %s17_s11 }
   0x2   :  { %s19_s13 = sshll.u32 %s130_s12, 4  ;;  %s20_s13 = int_to_ptr.vmem [resolvable:$true] %s19_s13 }
   0x3   :  { %22 = dma.hbm_to_vmem [thread:$0]  %s18_s11, 256, %s20_s13, [#allocation4]  }
   0x4   :  { %126 = dma.done.wait [#allocation4], 256  }
   0x5   :  { %127 = vsyncadd [#allocation4], 4294967040  ;;  %v30_v0 = vstv %s156_s0  ;;  %v27_v1 = vld [vmem:[#allocation3] sm:$0xff]  ;;  %v28_v2 = vld [vmem:[#allocation3 + $0x8] sm:$0xff]  ;;  %s131_s0 = smov [#allocation6]   ;;  %s56_s18 = sshll.u32 %s158_s2, 4  ;;  %s57_s18 = int_to_ptr.hbm [resolvable:$true] %s56_s18 }
   0x6   :  { %v31_v3 = vmul.f32 %v30_v0, %v27_v1  ;;  %v32_v4 = vmul.f32 %v30_v0, %v28_v2  ;;  %s54_s1 = sshll.u32 %s131_s0, 4  ;;  %s55_s1 = int_to_ptr.vmem [resolvable:$true] %s54_s1 }
   0x8   :  { %v33_v5 = vmul.f32 1.442695, %v31_v3  ;;  %v37_v6 = vsub.f32 0.0, %v31_v3  ;;  %v35_v7 = vmul.f32 1.442695, %v32_v4  ;;  %v38_v8 = vsub.f32 0.0, %v32_v4 }
   0xa   :  { %70 = vpow2.f32 %v33_v5  ;;  %v39_v9 = vmul.f32 1.442695, %v37_v6  ;;  %v41_v10 = vmul.f32 1.442695, %v38_v8 }
   0xb   :  { %72 = vpow2.f32 %v35_v7 }
   0xc   :  { %74 = vpow2.f32 %v39_v9 }
   0xd   :  { %76 = vpow2.f32 %v41_v10 }
  0x10   :  { %v71_v11 = vpop.eup %70 }
  0x11   :  { %v73_v12 = vpop.eup %72 }
  0x12   :  { %v75_v13 = vpop.eup %74 }
  0x13   :  { %v77_v14 = vpop.eup %76  ;;  %v43_v15 = vadd.f32 %v75_v13, %v71_v11 }
  0x14   :  { %v44_v16 = vadd.f32 %v77_v14, %v73_v12 }
  0x15   :  { %v66_v17 = vadd.f32 -2.0, %v43_v15 }
  0x16   :  { %v67_v18 = vadd.f32 -2.0, %v44_v16 }
  0x17   :  { %47 = vst [vmem:[#allocation6] sm:$0xff] %v66_v17 }
  0x18   :  { %48 = vst [vmem:[#allocation6 + $0x8] sm:$0xff] %v67_v18 }
  0x19   :  { %59 = dma.vmem_to_hbm [thread:$0]  %s55_s1, 256, %s57_s18, [#allocation5]  }
  0x1a   :  { %128 = dma.done.wait [#allocation5], 256  }
  0x1b   :  { %129 = vsyncadd [#allocation5], 4294967040 }
  0x1c   :  { %64 = vsyncpa [#allocation4], 1 }
  0x1d   :  { %65 = vsyncpa [#allocation5], 1 }

</bundles_post_ra>
